<compile_context>
chip_gen: v6e
topology: v6e:2x2x1
jax: 0.10.0
libtpu: 0.0.40
codegen_flags: <defaults>
</compile_context>

<pallas_src>
import functools
import math

import jax
import jax.numpy as jnp
from jax.experimental import pallas as pl
from jax.experimental.pallas import tpu as pltpu


def _round_up(x: int, m: int) -> int:
    return ((x + m - 1) // m) * m


# --------------------------------------------------------------------------
# Kernel 1: Linear  XT = X @ W + b   (bf16 MXU path, padded rows zeroed)
# --------------------------------------------------------------------------
def linear_kernel(x_ref, w_ref, b_ref, o_ref, *, n_valid):
    tr = o_ref.shape[0]
    xw = jnp.dot(x_ref[...], w_ref[...], preferred_element_type=jnp.float32)
    # Zero padded rows explicitly (otherwise they'd hold the bias), so later
    # stages never depend on zero K-padding of their other operand.
    row = pl.program_id(0) * tr + jax.lax.broadcasted_iota(jnp.int32, xw.shape, 0)
    o_ref[...] = jnp.where(row < n_valid, xw + b_ref[...], 0.0).astype(o_ref.dtype)
    # TODO(synk): add a K grid axis over Cin for very wide input features.


# --------------------------------------------------------------------------
# Kernel 2: streamed GEMM  out = (ReLU?)(A @ B), f32 accumulation
#   - f32 output  -> accumulate directly into o_ref (no scratch)
#   - bf16 output -> f32 VMEM scratch accumulator, cast in finalize
#   - rhs_resident: RHS is a full (K, Np) panel held in VMEM; slice per K step
# --------------------------------------------------------------------------
def _gemm_kernel(a_ref, b_ref, o_ref, *scratch, tk, relu, rhs_resident):
    acc_ref = scratch[0] if scratch else o_ref
    k = pl.program_id(1)

    @pl.when(k == 0)
    def _init():
        acc_ref[...] = jnp.zeros_like(acc_ref)

    if rhs_resident:
        off = pl.multiple_of(k * tk, tk)
        rhs = b_ref[pl.ds(off, tk), :]
    else:
        rhs = b_ref[...]
    acc_ref[...] += jnp.dot(a_ref[...], rhs, preferred_element_type=jnp.float32)

    @pl.when(k == pl.num_programs(1) - 1)
    def _finalize():
        r = acc_ref[...]
        if relu:
            r = jnp.maximum(r, 0.0)
        o_ref[...] = r.astype(o_ref.dtype)


def _streamed_gemm(a, b, *, out_dtype, tm, tk, relu,
                   resident_budget, lhs_buffer_depth=3):
    """out = (ReLU?)(a @ b) with f32 accumulation.

    a: (M, K) streamed as (tm, tk) tiles. b: (K, Np) held fully VMEM-resident
    when it fits `resident_budget`, else streamed per K tile. Extents are
    pre-padded: M % tm == 0, K % tk == 0, Np % 128 == 0.
    """
    M, K = a.shape
    Kb, Np = b.shape
    assert K == Kb and M % tm == 0 and K % tk == 0 and Np % 128 == 0
    n_k = K // tk

    elt = lambda dt: jnp.dtype(dt).itemsize
    rhs_resident = K * Np * elt(b.dtype) <= resident_budget
    direct_acc = jnp.dtype(out_dtype) == jnp.dtype(jnp.float32)

    if rhs_resident:
        # DMA'd once, stays resident across the whole grid (no re-streaming
        # once per row tile).
        b_spec = pl.BlockSpec((K, Np), lambda i, k: (0, 0))
    else:
        b_spec = pl.BlockSpec((tk, Np), lambda i, k: (k, 0))

    # Deeper buffering on the one truly streamed operand once there are enough
    # K steps for it to pay off.
    use_deep = lhs_buffer_depth > 2 and n_k >= lhs_buffer_depth
    if use_deep:
        a_spec = pl.BlockSpec((tm, tk), lambda i, k: (i, k),
                              pipeline_mode=pl.Buffered(lhs_buffer_depth))
    else:
        a_spec = pl.BlockSpec((tm, tk), lambda i, k: (i, k))

    scratch = [] if direct_acc else [pltpu.VMEM((tm, Np), jnp.float32)]

    # Explicit VMEM budget derived from the working set (double-buffered
    # streamed operands + output + accumulator), capped below v7x's
    # 64 MiB/TensorCore. The "parallel" row axis is sharded per core, so this
    # is a per-core budget.
    lhs_bufs = lhs_buffer_depth if use_deep else 2
    need = (lhs_bufs * tm * tk * elt(a.dtype)
            + (2 * K * Np if rhs_resident else 2 * tk * Np) * elt(b.dtype)
            + 2 * tm * Np * elt(out_dtype)
            + (0 if direct_acc else tm * Np * 4))
    vmem_limit = int(min(max(int(need * 1.25) + (4 << 20), 32 << 20), 56 << 20))

    return pl.pallas_call(
        functools.partial(_gemm_kernel, tk=tk, relu=relu,
                          rhs_resident=rhs_resident),
        out_shape=jax.ShapeDtypeStruct((M, Np), out_dtype),
        grid=(M // tm, n_k),
        in_specs=[a_spec, b_spec],
        out_specs=pl.BlockSpec((tm, Np), lambda i, k: (i, 0)),
        scratch_shapes=scratch,
        compiler_params=pltpu.CompilerParams(
            dimension_semantics=("parallel", "arbitrary"),
            vmem_limit_bytes=vmem_limit),
    )(a, b)


# --------------------------------------------------------------------------
# Factored, pre-scaled incidence operators (never builds the dense Laplacian).
# Emitted directly in bf16, already tile-padded (zero padding).
# --------------------------------------------------------------------------
def build_hgnn_factors(H, w_e, N, E, Nm, Nk, Ep, dtype=jnp.bfloat16):
    d_v = H @ w_e                                  # weighted vertex degree (N,)
    d_e = jnp.sum(H, axis=0)                       # hyperedge degree (E,)
    inv_sqrt_dv = jnp.where(d_v > 0, jax.lax.rsqrt(d_v), 0.0)
    inv_de = jnp.where(d_e > 0, 1.0 / d_e, 0.0)
    Hv = H * inv_sqrt_dv[:, None]                  # D_v^{-1/2} H            (N, E)
    A = Hv * (w_e * inv_de)[None, :]               # D_v^{-1/2} H W_e D_e^-1 (N, E)
    A_p = jnp.zeros((Nm, Ep), dtype).at[:N, :E].set(A.astype(dtype))
    B_p = jnp.zeros((Ep, Nk), dtype).at[:E, :N].set(Hv.T.astype(dtype))
    return A_p, B_p


# --------------------------------------------------------------------------
# Wrapper:  X' = ReLU( A @ (B @ (X @ W + b)) )
# --------------------------------------------------------------------------
def hgnn_conv(H, w_e, X, W, b, *, tm=512, tk=1024, te=512,
              compute_dtype=jnp.bfloat16,
              resident_budget=20 * 1024 * 1024):
    N, Cin = X.shape
    E = H.shape[1]
    Cout = W.shape[1]

    # Lane-dense output columns; 256-aligned when >128 (v6e/v7x 2x256^2 MXU).
    Cp = _round_up(Cout, 128)
    if Cp > 128:
        Cp = _round_up(Cout, 256)

    # Clip tiles to the (128-rounded) problem size so tiny problems don't
    # over-pad, while large problems get big, well-amortized DMAs.
    tm = min(tm, _round_up(N, 128))      # output / A row tile
    tk = min(tk, _round_up(N, 128))      # reduction tile over N (GEMM 1)
    te = min(te, _round_up(E, 128))      # hyperedge tile (GEMM 1 rows / GEMM 2 K)
    Nm = _round_up(N, tm)
    Nk = _round_up(N, tk)
    Ep = _round_up(E, te)

    # Factored incidence operators, bf16, tile-padded (no dense L).
    A_p, B_p = build_hgnn_factors(H, w_e, N, E, Nm, Nk, Ep, dtype=compute_dtype)

    # Padded operands for the linear (bf16 MXU path; bias stays f32).
    X_p = jnp.zeros((Nk, Cin), compute_dtype).at[:N, :].set(X.astype(compute_dtype))
    W_p = jnp.zeros((Cin, Cp), compute_dtype).at[:, :Cout].set(W.astype(compute_dtype))
    b_p = jnp.zeros((1, Cp), jnp.float32).at[:, :Cout].set(
        jnp.asarray(b, jnp.float32).reshape(1, -1))

    # ---- Stage 1: XT = X @ W + b  (row-tiled, padded rows zeroed) ------------
    tr = tk
    xt = pl.pallas_call(
        functools.partial(linear_kernel, n_valid=N),
        out_shape=jax.ShapeDtypeStruct((Nk, Cp), compute_dtype),
        grid=(Nk // tr,),
        in_specs=[
            pl.BlockSpec((tr, Cin), lambda i: (i, 0)),
            pl.BlockSpec((Cin, Cp), lambda i: (0, 0)),
            pl.BlockSpec((1, Cp), lambda i: (0, 0)),
        ],
        out_specs=pl.BlockSpec((tr, Cp), lambda i: (i, 0)),
        compiler_params=pltpu.CompilerParams(
            dimension_semantics=("parallel",)),
    )(X_p, W_p, b_p)

    # ---- Stage 2: M1 = (H^T D_v^{-1/2}) @ XT   -> (Ep, Cp), bf16 -------------
    m1 = _streamed_gemm(B_p, xt, out_dtype=compute_dtype, tm=te, tk=tk,
                        relu=False, resident_budget=resident_budget)

    # ---- Stage 3: out = ReLU( (D_v^{-1/2} H W_e D_e^{-1}) @ M1 ), f32 --------
    out_p = _streamed_gemm(A_p, m1, out_dtype=jnp.float32, tm=tm, tk=te,
                           relu=True, resident_budget=resident_budget)

    # Padded rows/cols sliced off here (free when Nm==N and Cp==Cout).
    return out_p[:N, :Cout]


if __name__ == "__main__":
    N, E = 16, 8          # vertices, hyperedges
    C_in, C_out = 8, 16   # feature dims

    key = jax.random.PRNGKey(0)
    k_x, k_h, k_w, k_b = jax.random.split(key, 4)

    # Input vertex features (N, C_in)
    X = jax.random.normal(k_x, (N, C_in), dtype=jnp.float32)

    # Random incidence matrix; guarantee every vertex / edge is non-empty
    H = (jax.random.uniform(k_h, (N, E)) < 0.35).astype(jnp.float32)
    H = H.at[jnp.arange(N), jnp.arange(N) % E].set(1.0)
    w_e = jnp.ones((E,), dtype=jnp.float32)           # hyperedge weights

    # PyTorch nn.Linear-style params (W transposed to (Cin, Cout), 1-D bias)
    bound = 1.0 / math.sqrt(C_in)
    W = jax.random.uniform(k_w, (C_in, C_out), jnp.float32, -bound, bound)
    b = jax.random.uniform(k_b, (C_out,), jnp.float32, -bound, bound)

    out = hgnn_conv(H, w_e, X, W, b)
    out = jax.block_until_ready(out)

    # ---- references (plain JAX) ----
    d_v = H @ w_e
    d_e = H.sum(axis=0)
    inv_sqrt_dv = jnp.where(d_v > 0, 1.0 / jnp.sqrt(d_v), 0.0)
    inv_de = jnp.where(d_e > 0, 1.0 / d_e, 0.0)
    L = (inv_sqrt_dv[:, None] * H * (w_e * inv_de)[None, :]) @ (H.T * inv_sqrt_dv[None, :])
    XT = X @ W + b[None, :]
    ref_exact = jnp.maximum(L @ XT, 0.0)

    # bf16-consistent reference mirroring the kernel's factored bf16 path.
    f = lambda z: z.astype(jnp.bfloat16).astype(jnp.float32)
    A_f = f(inv_sqrt_dv[:, None] * H * (w_e * inv_de)[None, :])
    B_f = f((H * inv_sqrt_dv[:, None]).T)
    XT_f = f(f(X) @ f(W) + b[None, :])
    M1_f = f(B_f @ XT_f)
    ref_bf16 = jnp.maximum(A_f @ M1_f, 0.0)

    assert out.shape == (N, C_out)
    err_bf = float(jnp.max(jnp.abs(out - ref_bf16)))
    err_ex = float(jnp.max(jnp.abs(out - ref_exact)))
    assert jnp.allclose(out, ref_bf16, atol=3e-2, rtol=3e-2), (
        "max |diff| vs bf16 ref:", err_bf)
    assert jnp.allclose(out, ref_exact, atol=5e-2, rtol=5e-2), (
        "max |diff| vs exact ref:", err_ex)

    print("KERNEL_OK")
</pallas_src>

<mosaic_0001>
module attributes {stable_mosaic.version = 11 : i64} {
  func.func @linear_kernel(%arg0: i32, %arg1: memref<128x8xbf16, #tpu.memory_space<vmem>>, %arg2: memref<8x128xbf16, #tpu.memory_space<vmem>>, %arg3: memref<1x128xf32, #tpu.memory_space<vmem>>, %arg4: memref<128x128xbf16, #tpu.memory_space<vmem>>) attributes {dimension_semantics = [#tpu.dimension_semantics<parallel>], iteration_bounds = array<i64: 1>, scalar_prefetch = 0 : i64, scratch_operands = 0 : i64, tpu.core_type = #tpu.core_type<tc>, window_params = [{transform_indices = @transform_0, window_bounds = array<i64: 128, 8>}, {pipeline_mode = #tpu.pipeline_mode<synchronous>, transform_indices = @transform_1, window_bounds = array<i64: 8, 128>}, {pipeline_mode = #tpu.pipeline_mode<synchronous>, transform_indices = @transform_2, window_bounds = array<i64: 1, 128>}, {transform_indices = @transform_3, window_bounds = array<i64: 128, 128>}]} {
    %c0 = arith.constant 0 : index
    %c0_0 = arith.constant 0 : index
    %0 = vector.load %arg1[%c0, %c0_0] : memref<128x8xbf16, #tpu.memory_space<vmem>>, vector<128x8xbf16>
    %c0_1 = arith.constant 0 : index
    %c0_2 = arith.constant 0 : index
    %1 = vector.load %arg2[%c0_1, %c0_2] : memref<8x128xbf16, #tpu.memory_space<vmem>>, vector<8x128xbf16>
    %cst = arith.constant dense<0.000000e+00> : vector<128x128xf32>
    %2 = tpu.matmul %0, %1, %cst {dimension_numbers = #tpu.dot_dimension_numbers<[1], [0], [0], [1], [0, 0, 1, 1], [], []>} : vector<128x8xbf16>, vector<8x128xbf16>, vector<128x128xf32> -> vector<128x128xf32>
    %c128_i32 = arith.constant 128 : i32
    %3 = arith.muli %arg0, %c128_i32 : i32
    %4 = tpu.iota {dimensions = array<i32: 0>} : vector<128x128xi32>
    %5 = vector.broadcast %3 : i32 to vector<128x128xi32>
    %6 = arith.addi %5, %4 : vector<128x128xi32>
    %c16_i32 = arith.constant 16 : i32
    %7 = vector.broadcast %c16_i32 : i32 to vector<128x128xi32>
    %8 = arith.cmpi slt, %6, %7 : vector<128x128xi32>
    %c0_3 = arith.constant 0 : index
    %c0_4 = arith.constant 0 : index
    %9 = vector.load %arg3[%c0_3, %c0_4] : memref<1x128xf32, #tpu.memory_space<vmem>>, vector<1x128xf32>
    %10 = vector.broadcast %9 : vector<1x128xf32> to vector<128x128xf32>
    %11 = arith.addf %2, %10 : vector<128x128xf32>
    %cst_5 = arith.constant 0.000000e+00 : f32
    %12 = vector.broadcast %cst_5 : f32 to vector<128x128xf32>
    %13 = arith.select %8, %11, %12 : vector<128x128xi1>, vector<128x128xf32>
    %14 = arith.truncf %13 : vector<128x128xf32> to vector<128x128xbf16>
    %c0_6 = arith.constant 0 : index
    %c0_7 = arith.constant 0 : index
    %15 = vector.load %arg4[%c0_6, %c0_7] : memref<128x128xbf16, #tpu.memory_space<vmem>>, vector<128x128xbf16>
    tpu.vector_store %arg4[%c0_6, %c0_7], %14 {strides = array<i32>} : memref<128x128xbf16, #tpu.memory_space<vmem>>, vector<128x128xbf16>,
    return
  }
  func.func @transform_0(%arg0: i32) -> (i32, i32) {
    %c0_i32 = arith.constant 0 : i32
    %c0_i32_0 = arith.constant 0 : i32
    return %arg0, %c0_i32 : i32, i32
  }
  func.func @transform_1(%arg0: i32) -> (i32, i32) {
    %c0_i32 = arith.constant 0 : i32
    %c0_i32_0 = arith.constant 0 : i32
    %c0_i32_1 = arith.constant 0 : i32
    return %c0_i32, %c0_i32_0 : i32, i32
  }
  func.func @transform_2(%arg0: i32) -> (i32, i32) {
    %c0_i32 = arith.constant 0 : i32
    %c0_i32_0 = arith.constant 0 : i32
    %c0_i32_1 = arith.constant 0 : i32
    return %c0_i32, %c0_i32_0 : i32, i32
  }
  func.func @transform_3(%arg0: i32) -> (i32, i32) {
    %c0_i32 = arith.constant 0 : i32
    %c0_i32_0 = arith.constant 0 : i32
    return %arg0, %c0_i32 : i32, i32
  }
}

</mosaic_0001>

<bundles_post_ra>
// kernel: tpu_custom_call.1
= control target key start
LH: loop header
LB: loop body
LE: loop exit
PB: predicated region body
PF: predicated region fallthrough
CT: control target
= control target key end

     0   :  { %vm156_vm0 = vcmask 1043456   ;;  %vm131_vm1 = vcmask 64512   ;;  %s539_s0 = inlined_call_operand.vmem [shape: bf16[128,8], index: 0, kind: input, shape index: {}]   ;;  %s540_s1 = inlined_call_operand.vmem [shape: bf16[8,128], index: 1, kind: input, shape index: {}]   ;;  %s541_s2 = inlined_call_operand.vmem [shape: f32[1,128], index: 2, kind: input, shape index: {}]   ;;  %s542_s3 = inlined_call_operand.hbm [shape: bf16[128,128], index: 3, kind: output, shape index: {}]  }
   0x1   :  { %v32_v0 = vld [vmem:[%s540_s1] sm:$0xf]  ;;  %v446_v4 = vld [vmem:[%s539_s0 + $0x8] sm:$0xff]   ;;  %v448_v6 = vld [vmem:[%s539_s0 + $0x10] sm:$0xff]  }
   0x2   :  { %v444_v1 = vld [vmem:[%s539_s0] sm:$0xff]   ;;  %438 = vmatprep.subr.msk.bf16.mxu0 %vm156_vm0, %v32_v0  ;;  %439 = vmatprep.subr.msk.bf16.mxu1 %vm156_vm0, %v32_v0  ;;  %v158_v2 = vsel %vm156_vm0, %v32_v0, 0  ;;  %v447_v5 = vld [vmem:[%s539_s0 + $0x28] sm:$0xff]   ;;  %v449_v7 = vld [vmem:[%s539_s0 + $0x30] sm:$0xff]  }
   0x3   :  { %419 = vmatpush3.bf16.msra.mxu0 %v158_v2  ;;  %437 = vmatpush3.bf16.msra.mxu1 %v158_v2  ;;  %v445_v3 = vld [vmem:[%s539_s0 + $0x20] sm:$0xff]  }
   0x4   :  { %420 = vmatprep.mubr.msk.bf16.mxu0 %vm131_vm1, %v444_v1  ;;  %428 = vmatprep.mubr.msk.bf16.mxu1 %vm131_vm1, %v445_v3 }
   0x6   :  { %421 = vmatmul.mubr.msk.bf16.vlgmr.msra.gmra.mxu0 %vm131_vm1, %v446_v4  ;;  %429 = vmatmul.mubr.msk.bf16.vlgmr.msra.gmra.mxu1 %vm131_vm1, %v447_v5 }
   0x7   :  { %424 = vmatprep.mubr.msk.bf16.mxu0 %vm131_vm1, %v448_v6  ;;  %432 = vmatprep.mubr.msk.bf16.mxu1 %vm131_vm1, %v449_v7 }
   0x8   :  { %8 = vsyncpa [#allocation3], 0  ;;  %v450_v8 = vld [vmem:[%s539_s0 + $0x18] sm:$0xff]   ;;  %v474_v10 = vmov 0.0|0.0   ;;  %v369_v17 = vld [vmem:[%s541_s2] ss:$0 sm:$0xff] }
   0x9   :  { %v451_v9 = vld [vmem:[%s539_s0 + $0x38] sm:$0xff]   ;;  %v388_v11 = vcombine.low %v474_v10, %v474_v10  ;;  %v389_v12 = vcombine.high %v474_v10, %v474_v10  ;;  %s475_s30 = smov [#allocation2]  }
   0xa   :  { %s358_s4 = sshll.u32 %s475_s30, 4  ;;  %s359_s4 = int_to_ptr.vmem [resolvable:$true] %s358_s4 }
   0xb   :  { %339 = vst [vmem:[#allocation2 + $0x8] sm:$0xf] %v388_v11  ;;  %340 = vst [vmem:[#allocation2 + $0xc] sm:$0xf] %v389_v12  ;;  %s452_s5 = scalar_lea.vmem %s359_s4, 1024  ;;  %p457_p1 = scmp.lt.s32.totalorder %s359_s4, %s359_s4 }
   0xc   :  { %341 = vst [vmem:[#allocation2 + $0x10] sm:$0xf] %v388_v11  ;;  %342 = vst [vmem:[#allocation2 + $0x14] sm:$0xf] %v389_v12  ;;  %p453_p0 = scmp.ne.s32.totalorder %s359_s4, %s452_s5  ;;  %p458_p2 = scmp.lt.s32.totalorder %s452_s5, %s452_s5 }
   0xd   :  { %343 = vst [vmem:[#allocation2 + $0x18] sm:$0xf] %v388_v11  ;;  %344 = vst [vmem:[#allocation2 + $0x1c] sm:$0xf] %v389_v12 }
   0xe   :  { %425 = vmatmul.mubr.msk.bf16.gmra.mxu0 %vm131_vm1, %v450_v8  ;;  %433 = vmatmul.mubr.msk.bf16.gmra.mxu1 %vm131_vm1, %v451_v9  ;;  %345 = vst [vmem:[#allocation2 + $0x20] sm:$0xf] %v388_v11  ;;  %346 = vst [vmem:[#allocation2 + $0x24] sm:$0xf] %v389_v12  ;;  %p459_p3 = por %p458_p2, %p457_p1 }
   0xf   :  { %347 = vst [vmem:[#allocation2 + $0x28] sm:$0xf] %v388_v11  ;;  %348 = vst [vmem:[#allocation2 + $0x2c] sm:$0xf] %v389_v12 }
  0x10   :  { %349 = vst [vmem:[#allocation2 + $0x30] sm:$0xf] %v388_v11  ;;  %350 = vst [vmem:[#allocation2 + $0x34] sm:$0xf] %v389_v12  ;;  %p460_p4 = pnand %p459_p3, %p453_p0 }
  0x11   :  { %351 = vst [vmem:[#allocation2 + $0x38] sm:$0xf] %v388_v11  ;;  %352 = vst [vmem:[#allocation2 + $0x3c] sm:$0xf] %v389_v12 }
  0xc6   :  { %v422_v13 = vpop.f32.mrf.mxu0  ;;  %v430_v14 = vpop.f32.mrf.mxu1 }
  0xc8   :  { %v194_v15 = vpop.f32.mrf.mxu0  ;;  %v226_v16 = vpop.f32.mrf.mxu1 }
  0xc9   :  { %v195_v21 = vadd.f32 %v369_v17, %v194_v15 }
  0xca   :  { %v423_v18 = vpop.f32.mrf.mxu0  ;;  %v431_v19 = vpop.f32.mrf.mxu1 }
  0xcc   :  { %v197_v20 = vpop.f32.mrf.mxu0  ;;  %v229_v23 = vpop.f32.mrf.mxu1 }
  0xcd   :  { %v198_v22 = vadd.f32 %v369_v17, %v197_v20 }
  0xce   :  { %v426_v24 = vpop.f32.mrf.mxu0  ;;  %v434_v26 = vpop.f32.mrf.mxu1 }
  0xcf   :  { %v407_v25 = vpack.c.bf16 %v198_v22, %v195_v21 }
  0xd0   :  { %v210_v27 = vpop.f32.mrf.mxu0  ;;  %v242_v28 = vpop.f32.mrf.mxu1 }
  0xd1   :  { %408 = vst [vmem:[#allocation2] sm:$0xff] %v407_v25  }
  0xd2   :  { %v427_v29 = vpop.f32.mrf.mxu0 }
  0xd3   :  { %463 = shalt.err (!%p460_p4)
}
  0xd4   :  { %s476_s2 = smov 64   ;;  %s477_s6 = smov 4   ;;  %v435_v30 = vpop.f32.mrf.mxu1  ;;  %v213_v31 = vpop.f32.mrf.mxu0 }
  0xd5   :  { %364 = dma.vmem_to_hbm [thread:$0]  %s359_s4, 1024, %s542_s3, [#allocation3], %s476_s2, %s476_s2, %s477_s6  }
  0xd6   :  { %v245_v32 = vpop.f32.mrf.mxu1 }
  0xd7   :  { %472 = dma.done.wait [#allocation3], 1024  }
  0xd8   :  { %473 = vsyncadd [#allocation3], 4294966272 }
  0xd9   :  { %368 = vsyncpa [#allocation3], 1 }

</bundles_post_ra>
